<compile_context>
chip_gen: v7x
topology: tpu7x:2x2x1
jax: 0.10.0
libtpu: 0.0.40
codegen_flags: <defaults>
</compile_context>

<pallas_src>
import jax
import jax.numpy as jnp
from jax.experimental import pallas as pl
from jax.experimental.pallas import tpu as pltpu

EPS = 1e-8


# ------------------------- fused sens_net + varnet kernel -------------------------
def _fused_kernel(k_ref, m_ref, w_ref, b_ref, o_ref):
    kr = k_ref[0, 0]                                     # (C, N) real plane
    ki = k_ref[1, 0]                                     # (C, N) imag plane

    # --- fused sens_net (eval / no_grad -> pure forward): RSS normalization ---
    rss2 = jnp.sum(kr * kr + ki * ki, axis=0, keepdims=True) + EPS    # (1, N)
    inv = jax.lax.rsqrt(rss2)
    sr = kr * inv                                        # (C, N)
    si = ki * inv

    # --- sens-reduce: sum_c conj(S_c) * k_c -> combined estimate, 2 rows (r, i) ---
    comb_r = jnp.sum(sr * kr + si * ki, axis=0, keepdims=True)        # (1, N)
    comb_i = jnp.sum(sr * ki - si * kr, axis=0, keepdims=True)        # (1, N)

    # --- refinement: single stacked (2, N) x (N, N) bf16 matmul on the MXU ---
    comb = jnp.concatenate([comb_r, comb_i], axis=0).astype(jnp.bfloat16)   # (2, N)
    ref_ri = jnp.dot(comb, w_ref[...],
                     preferred_element_type=jnp.float32) + b_ref[...]       # (2, N) f32
    ref_r = ref_ri[0:1]
    ref_i = ref_ri[1:2]

    # --- sens-expand: S_c * refined -> per-coil prediction ---
    exp_r = sr * ref_r - si * ref_i
    exp_i = sr * ref_i + si * ref_r

    # --- hard data consistency: keep acquired samples, fill the rest ---
    m = m_ref[0]                                         # (1, N)
    o_ref[0, 0] = m * kr + (1.0 - m) * exp_r
    o_ref[1, 0] = m * ki + (1.0 - m) * exp_i


def _fused_forward(k2, mask_flat, w_refine, b_refine):
    """k2: (2, B, C, N) f32; mask_flat: (B, 1, N) f32; w: (N, N) bf16; b: (1, N) f32."""
    _, B, C, N = k2.shape
    k_spec = pl.BlockSpec((2, 1, C, N), lambda b: (0, b, 0, 0))
    m_spec = pl.BlockSpec((1, 1, N), lambda b: (b, 0, 0))
    w_spec = pl.BlockSpec((N, N), lambda b: (0, 0))      # constant block -> DMA'd once
    b_spec = pl.BlockSpec((1, N), lambda b: (0, 0))
    return pl.pallas_call(
        _fused_kernel,
        grid=(B,),
        in_specs=[k_spec, m_spec, w_spec, b_spec],
        out_specs=k_spec,
        out_shape=jax.ShapeDtypeStruct((2, B, C, N), jnp.float32),
        compiler_params=pltpu.CompilerParams(
            dimension_semantics=("parallel",),           # shards B across v7x's 2 TCs
            vmem_limit_bytes=32 * 1024 * 1024,           # explicit; safe on v7x 64 MiB VMEM
        ),
    )(k2, mask_flat, w_refine, b_refine)


# ----------------------------------- Stage2Engine ----------------------------------
def stage2_engine_forward(masked_kspace, mask, params, epoch=0):
    """masked_kspace: [B, C, H, W, 2] f32 ; mask: [B, 1, 1, W, 1] (0/1)."""
    B, C, H, W, _ = masked_kspace.shape
    N = H * W

    _ = mask.astype(jnp.int32)   # mirrors the `mask.int()` argument passed to sens_net

    # One layout pass: (B, C, H, W, 2) -> (2, B, C, N) lane-dense real/imag planes.
    k2 = jnp.moveaxis(masked_kspace.reshape(B, C, N, 2), -1, 0)

    # Sampling mask broadcast along H and flattened onto the lane axis.
    mask_flat = jnp.broadcast_to(
        mask.astype(jnp.float32)[:, 0, :, :, 0], (B, H, W)
    ).reshape(B, 1, N)

    # sens_net runs in eval mode under torch.no_grad(); the maps are computed
    # inside the fused kernel (forward-only here, so no gradient flows anyway).
    out2 = _fused_forward(k2, mask_flat, params["w_refine"], params["b_refine"])

    # (2, B, C, N) -> (B, C, H, W, 2)
    return jnp.moveaxis(out2, 0, -1).reshape(B, C, H, W, 2)


# -------------------------------- pure-JAX reference --------------------------------
def _reference(masked_kspace, mask, params):
    B, C, H, W, _ = masked_kspace.shape
    N = H * W
    kr = masked_kspace[..., 0].reshape(B, C, N)
    ki = masked_kspace[..., 1].reshape(B, C, N)
    inv = jax.lax.rsqrt(jnp.sum(kr * kr + ki * ki, axis=1, keepdims=True) + EPS)
    sr, si = kr * inv, ki * inv
    comb_r = jnp.sum(sr * kr + si * ki, axis=1, keepdims=True)
    comb_i = jnp.sum(sr * ki - si * kr, axis=1, keepdims=True)
    comb = jnp.concatenate([comb_r, comb_i], axis=1).astype(jnp.bfloat16)   # (B, 2, N)
    ref_ri = jnp.dot(comb, params["w_refine"],
                     preferred_element_type=jnp.float32) + params["b_refine"]
    ref_r, ref_i = ref_ri[:, 0:1], ref_ri[:, 1:2]
    exp_r = sr * ref_r - si * ref_i
    exp_i = sr * ref_i + si * ref_r
    m = jnp.broadcast_to(mask.astype(jnp.float32)[:, 0, :, :, 0],
                         (B, H, W)).reshape(B, 1, N)
    out_r = m * kr + (1.0 - m) * exp_r
    out_i = m * ki + (1.0 - m) * exp_i
    return jnp.stack([out_r.reshape(B, C, H, W),
                      out_i.reshape(B, C, H, W)], axis=-1)


if __name__ == "__main__":
    B, C, H, W = 2, 4, 16, 16
    N = H * W

    key = jax.random.PRNGKey(0)
    k_ksp, k_w = jax.random.split(key)

    masked_kspace = jax.random.normal(k_ksp, (B, C, H, W, 2), dtype=jnp.float32)

    # undersampling mask along W: every 2nd column + a centered block
    cols = jnp.arange(W)
    mask_1d = ((cols % 2 == 0) | ((cols >= W // 2 - 2) & (cols < W // 2 + 2)))
    mask = jnp.broadcast_to(
        mask_1d.astype(jnp.float32)[None, None, None, :, None], (B, 1, 1, W, 1)
    )
    masked_kspace = masked_kspace * mask  # zero-out unacquired samples

    # deterministic synthetic weights; refine weight stored as bf16 (MXU-native)
    params = {
        "w_refine": (0.02 * jax.random.normal(k_w, (N, N), dtype=jnp.float32)
                     ).astype(jnp.bfloat16),
        "b_refine": jnp.zeros((1, N), dtype=jnp.float32),
    }

    out = stage2_engine_forward(masked_kspace, mask, params, epoch=0)
    out = jax.block_until_ready(out)

    ref = _reference(masked_kspace, mask, params)
    assert out.shape == (B, C, H, W, 2)
    assert jnp.allclose(out, ref, atol=1e-3, rtol=1e-3), \
        f"max abs err {float(jnp.max(jnp.abs(out - ref)))}"

    print("KERNEL_OK")
</pallas_src>

<mosaic_0001>
module attributes {stable_mosaic.version = 11 : i64} {
  func.func @_fused_kernel(%arg0: i32, %arg1: memref<2x1x4x256xf32, #tpu.memory_space<vmem>>, %arg2: memref<1x1x256xf32, #tpu.memory_space<vmem>>, %arg3: memref<256x256xbf16, #tpu.memory_space<vmem>>, %arg4: memref<1x256xf32, #tpu.memory_space<vmem>>, %arg5: memref<2x1x4x256xf32, #tpu.memory_space<vmem>>) attributes {dimension_semantics = [#tpu.dimension_semantics<parallel>], iteration_bounds = array<i64: 2>, scalar_prefetch = 0 : i64, scratch_operands = 0 : i64, tpu.core_type = #tpu.core_type<tc>, window_params = [{transform_indices = @transform_0, window_bounds = array<i64: 2, 1, 4, 256>}, {transform_indices = @transform_1, window_bounds = array<i64: 1, 1, 256>}, {pipeline_mode = #tpu.pipeline_mode<synchronous>, transform_indices = @transform_2, window_bounds = array<i64: 256, 256>}, {pipeline_mode = #tpu.pipeline_mode<synchronous>, transform_indices = @transform_3, window_bounds = array<i64: 1, 256>}, {transform_indices = @transform_4, window_bounds = array<i64: 2, 1, 4, 256>}]} {
    %c0 = arith.constant 0 : index
    %c0_0 = arith.constant 0 : index
    %c0_1 = arith.constant 0 : index
    %c0_2 = arith.constant 0 : index
    %0 = vector.load %arg1[%c0, %c0_0, %c0_1, %c0_2] : memref<2x1x4x256xf32, #tpu.memory_space<vmem>>, vector<1x1x4x256xf32>
    %1 = vector.shape_cast %0 : vector<1x1x4x256xf32> to vector<4x256xf32>
    %c1 = arith.constant 1 : index
    %c0_3 = arith.constant 0 : index
    %c0_4 = arith.constant 0 : index
    %c0_5 = arith.constant 0 : index
    %2 = vector.load %arg1[%c1, %c0_3, %c0_4, %c0_5] : memref<2x1x4x256xf32, #tpu.memory_space<vmem>>, vector<1x1x4x256xf32>
    %3 = vector.shape_cast %2 : vector<1x1x4x256xf32> to vector<4x256xf32>
    %4 = arith.mulf %1, %1 : vector<4x256xf32>
    %5 = arith.mulf %3, %3 : vector<4x256xf32>
    %6 = arith.addf %4, %5 : vector<4x256xf32>
    %cst = arith.constant dense<0.000000e+00> : vector<256xf32>
    %7 = vector.multi_reduction <add>, %6, %cst [0] : vector<4x256xf32> to vector<256xf32>
    %8 = vector.shape_cast %7 : vector<256xf32> to vector<1x256xf32>
    %cst_6 = arith.constant 9.99999993E-9 : f32
    %9 = vector.broadcast %cst_6 : f32 to vector<1x256xf32>
    %10 = arith.addf %8, %9 : vector<1x256xf32>
    %11 = math.rsqrt %10 : vector<1x256xf32>
    %12 = vector.broadcast %11 : vector<1x256xf32> to vector<4x256xf32>
    %13 = arith.mulf %1, %12 : vector<4x256xf32>
    %14 = vector.broadcast %11 : vector<1x256xf32> to vector<4x256xf32>
    %15 = arith.mulf %3, %14 : vector<4x256xf32>
    %16 = arith.mulf %13, %1 : vector<4x256xf32>
    %17 = arith.mulf %15, %3 : vector<4x256xf32>
    %18 = arith.addf %16, %17 : vector<4x256xf32>
    %cst_7 = arith.constant dense<0.000000e+00> : vector<256xf32>
    %19 = vector.multi_reduction <add>, %18, %cst_7 [0] : vector<4x256xf32> to vector<256xf32>
    %20 = vector.shape_cast %19 : vector<256xf32> to vector<1x256xf32>
    %21 = arith.mulf %13, %3 : vector<4x256xf32>
    %22 = arith.mulf %15, %1 : vector<4x256xf32>
    %23 = arith.subf %21, %22 : vector<4x256xf32>
    %cst_8 = arith.constant dense<0.000000e+00> : vector<256xf32>
    %24 = vector.multi_reduction <add>, %23, %cst_8 [0] : vector<4x256xf32> to vector<256xf32>
    %25 = vector.shape_cast %24 : vector<256xf32> to vector<1x256xf32>
    %26 = tpu.concatenate %20, %25 in 0 : vector<1x256xf32>, vector<1x256xf32> -> vector<2x256xf32>
    %27 = arith.truncf %26 : vector<2x256xf32> to vector<2x256xbf16>
    %c0_9 = arith.constant 0 : index
    %c0_10 = arith.constant 0 : index
    %28 = vector.load %arg3[%c0_9, %c0_10] : memref<256x256xbf16, #tpu.memory_space<vmem>>, vector<256x256xbf16>
    %cst_11 = arith.constant dense<0.000000e+00> : vector<2x256xf32>
    %29 = tpu.matmul %27, %28, %cst_11 {dimension_numbers = #tpu.dot_dimension_numbers<[1], [0], [0], [1], [0, 0, 1, 1], [], []>} : vector<2x256xbf16>, vector<256x256xbf16>, vector<2x256xf32> -> vector<2x256xf32>
    %c0_12 = arith.constant 0 : index
    %c0_13 = arith.constant 0 : index
    %30 = vector.load %arg4[%c0_12, %c0_13] : memref<1x256xf32, #tpu.memory_space<vmem>>, vector<1x256xf32>
    %31 = vector.broadcast %30 : vector<1x256xf32> to vector<2x256xf32>
    %32 = arith.addf %29, %31 : vector<2x256xf32>
    %33 = vector.extract_strided_slice %32 {offsets = [0, 0], sizes = [1, 256], strides = [1, 1]} : vector<2x256xf32> to vector<1x256xf32>
    %34 = vector.extract_strided_slice %32 {offsets = [1, 0], sizes = [1, 256], strides = [1, 1]} : vector<2x256xf32> to vector<1x256xf32>
    %35 = vector.broadcast %33 : vector<1x256xf32> to vector<4x256xf32>
    %36 = arith.mulf %13, %35 : vector<4x256xf32>
    %37 = vector.broadcast %34 : vector<1x256xf32> to vector<4x256xf32>
    %38 = arith.mulf %15, %37 : vector<4x256xf32>
    %39 = arith.subf %36, %38 : vector<4x256xf32>
    %40 = vector.broadcast %34 : vector<1x256xf32> to vector<4x256xf32>
    %41 = arith.mulf %13, %40 : vector<4x256xf32>
    %42 = vector.broadcast %33 : vector<1x256xf32> to vector<4x256xf32>
    %43 = arith.mulf %15, %42 : vector<4x256xf32>
    %44 = arith.addf %41, %43 : vector<4x256xf32>
    %c0_14 = arith.constant 0 : index
    %c0_15 = arith.constant 0 : index
    %c0_16 = arith.constant 0 : index
    %45 = vector.load %arg2[%c0_14, %c0_15, %c0_16] : memref<1x1x256xf32, #tpu.memory_space<vmem>>, vector<1x1x256xf32>
    %46 = vector.shape_cast %45 : vector<1x1x256xf32> to vector<1x256xf32>
    %47 = vector.broadcast %46 : vector<1x256xf32> to vector<4x256xf32>
    %48 = arith.mulf %47, %1 : vector<4x256xf32>
    %cst_17 = arith.constant 1.000000e+00 : f32
    %49 = vector.broadcast %cst_17 : f32 to vector<1x256xf32>
    %50 = arith.subf %49, %46 : vector<1x256xf32>
    %51 = vector.broadcast %50 : vector<1x256xf32> to vector<4x256xf32>
    %52 = arith.mulf %51, %39 : vector<4x256xf32>
    %53 = arith.addf %48, %52 : vector<4x256xf32>
    %c0_18 = arith.constant 0 : index
    %c0_19 = arith.constant 0 : index
    %c0_20 = arith.constant 0 : index
    %c0_21 = arith.constant 0 : index
    %54 = vector.load %arg5[%c0_18, %c0_19, %c0_20, %c0_21] : memref<2x1x4x256xf32, #tpu.memory_space<vmem>>, vector<1x1x4x256xf32>
    %55 = vector.shape_cast %54 : vector<1x1x4x256xf32> to vector<4x256xf32>
    %56 = vector.shape_cast %53 : vector<4x256xf32> to vector<1x1x4x256xf32>
    tpu.vector_store %arg5[%c0_18, %c0_19, %c0_20, %c0_21], %56 {strides = array<i32>} : memref<2x1x4x256xf32, #tpu.memory_space<vmem>>, vector<1x1x4x256xf32>,
    %57 = vector.broadcast %46 : vector<1x256xf32> to vector<4x256xf32>
    %58 = arith.mulf %57, %3 : vector<4x256xf32>
    %cst_22 = arith.constant 1.000000e+00 : f32
    %59 = vector.broadcast %cst_22 : f32 to vector<1x256xf32>
    %60 = arith.subf %59, %46 : vector<1x256xf32>
    %61 = vector.broadcast %60 : vector<1x256xf32> to vector<4x256xf32>
    %62 = arith.mulf %61, %44 : vector<4x256xf32>
    %63 = arith.addf %58, %62 : vector<4x256xf32>
    %c1_23 = arith.constant 1 : index
    %c0_24 = arith.constant 0 : index
    %c0_25 = arith.constant 0 : index
    %c0_26 = arith.constant 0 : index
    %64 = vector.load %arg5[%c1_23, %c0_24, %c0_25, %c0_26] : memref<2x1x4x256xf32, #tpu.memory_space<vmem>>, vector<1x1x4x256xf32>
    %65 = vector.shape_cast %64 : vector<1x1x4x256xf32> to vector<4x256xf32>
    %66 = vector.shape_cast %63 : vector<4x256xf32> to vector<1x1x4x256xf32>
    tpu.vector_store %arg5[%c1_23, %c0_24, %c0_25, %c0_26], %66 {strides = array<i32>} : memref<2x1x4x256xf32, #tpu.memory_space<vmem>>, vector<1x1x4x256xf32>,
    return
  }
  func.func @transform_0(%arg0: i32) -> (i32, i32, i32, i32) {
    %c0_i32 = arith.constant 0 : i32
    %c0_i32_0 = arith.constant 0 : i32
    %c0_i32_1 = arith.constant 0 : i32
    %c0_i32_2 = arith.constant 0 : i32
    return %c0_i32, %arg0, %c0_i32_0, %c0_i32_1 : i32, i32, i32, i32
  }
  func.func @transform_1(%arg0: i32) -> (i32, i32, i32) {
    %c0_i32 = arith.constant 0 : i32
    %c0_i32_0 = arith.constant 0 : i32
    %c0_i32_1 = arith.constant 0 : i32
    return %arg0, %c0_i32, %c0_i32_0 : i32, i32, i32
  }
  func.func @transform_2(%arg0: i32) -> (i32, i32) {
    %c0_i32 = arith.constant 0 : i32
    %c0_i32_0 = arith.constant 0 : i32
    %c0_i32_1 = arith.constant 0 : i32
    return %c0_i32, %c0_i32_0 : i32, i32
  }
  func.func @transform_3(%arg0: i32) -> (i32, i32) {
    %c0_i32 = arith.constant 0 : i32
    %c0_i32_0 = arith.constant 0 : i32
    %c0_i32_1 = arith.constant 0 : i32
    return %c0_i32, %c0_i32_0 : i32, i32
  }
  func.func @transform_4(%arg0: i32) -> (i32, i32, i32, i32) {
    %c0_i32 = arith.constant 0 : i32
    %c0_i32_0 = arith.constant 0 : i32
    %c0_i32_1 = arith.constant 0 : i32
    %c0_i32_2 = arith.constant 0 : i32
    return %c0_i32, %arg0, %c0_i32_0, %c0_i32_1 : i32, i32, i32, i32
  }
}

</mosaic_0001>

<bundles_post_ra>
// kernel: tpu_custom_call.1
= control target key start
LH: loop header
LB: loop body
LE: loop exit
PB: predicated region body
PF: predicated region fallthrough
CT: control target
= control target key end

     0   :  { %s1473_s0 = inlined_call_operand.hbm [shape: f32[2,2,4,256], index: 0, kind: input, shape index: {}]   ;;  %s1474_s1 = inlined_call_operand.hbm [shape: f32[2,1,256], index: 1, kind: input, shape index: {}]   ;;  %s1475_s2 = inlined_call_operand.hbm [shape: bf16[256,256], index: 2, kind: input, shape index: {}]   ;;  %s1476_s3 = inlined_call_operand.vmem [shape: f32[1,256], index: 3, kind: input, shape index: {}]   ;;  %s1477_s4 = inlined_call_operand.hbm [shape: f32[2,2,4,256], index: 4, kind: output, shape index: {}]  }
   0x1   :  { %1483 = sst [smem:[#allocation14_spill]] %s1473_s0 }
   0x2   :  { %1484 = sst [smem:[#allocation15_spill]] %s1475_s2 }
   0x3   :  { %9 = vsyncpa [#allocation3], 0 }
   0x4   :  { %11 = vsyncpa [#allocation3 + $0x1], 0 }
   0x5   :  { %12 = vsyncpa [#allocation6], 0 }
   0x6   :  { %14 = vsyncpa [#allocation6 + $0x1], 0 }
   0x7   :  { %15 = vsyncpa [#allocation4], 0 }
   0x8   :  { %17 = vsyncpa [#allocation4 + $0x1], 0  ;;  %s1178_s15 = smov 0   ;;  %s1180_s16 = smov 0  }
   0x9   :  { %s1182_s17 = smov 0   ;;  %s1184_s18 = smov 0  }
   0xa LB: > { %s1199_s19 = sadd.s32 4294967295, %s1141_s18   ;;  %s800_s20 = sadd.s32 4294967294, %s1141_s18   ;;  %s1141_s18 = sphi %s1184_s18, %s1510_s18   ;;  %s1137_s17 = sphi %s1182_s17, %s1509_s17   ;;  %s1133_s16 = sphi %s1180_s16, %s1508_s16   ;;  %s1129_s15 = sphi %s1178_s15, %s1507_s15  }
   0xb   : > { %s1203_s21 = sadd.s32 1, %s1141_s18   ;;  %s30_s22 = sadd.s32 1, %s1137_s17 }
   0xc   : > { %s27_s23 = ssub.s32 %s1141_s18, %s1203_s21  ;;  %p37_p0 = scmp.ne.s32.totalorder %s1137_s17, %s1133_s16 }
   0xd   : > { %p28_p1 = scmp.eq.s32.totalorder %s27_s23, 0  ;;  %p38_p2 = scmp.eq.s32.totalorder %s1141_s18, 0 }
   0xe   : > { %p43_p3 = scmp.ne.s32.totalorder %s1133_s16, %s1129_s15  ;;  %p1478_p4 = scmp.eq.s32.totalorder %s1199_s19, 0 }
   0xf   : > { %s1215_s24 = scalar_select %p28_p1, %s1137_s17, %s30_s22  }
  0x10   : > { %p1217_p5 = por %p38_p2, %p37_p0  ;;  %p1223_p6 = por %p1478_p4, %p43_p3 }
  0x11   : > { %1485 = sst [smem:[#allocation13_spill]] %s1215_s24  ;;  %p135_p7 = scmp.eq.s32.totalorder %s1199_s19, 1 }
  0x12   : > { %s1486_s25 = scalar_select %p1217_p5, 1, 0 }
  0x13   : > { %s1487_s26 = scalar_select %p1223_p6, 1, 0 }
  0x14   : > { %p141_p8 = scmp.eq.s32.totalorder %s800_s20, 1  ;;  %p801_p9 = scmp.ge.s32.totalorder %s1141_s18, 1 }
  0x15   : > { %p148_p10 = scmp.lt.s32.totalorder %s1141_s18, 3  ;;  %p1230_p11 = por %p135_p7, %p37_p0 }
  0x16   : > { %p1234_p12 = por %p141_p8, %p43_p3  ;;  %s1143_s30 = smov [#allocation7]  }
  0x17   : > { %s1488_s27 = scalar_select %p1230_p11, 1, 0 }
  0x18   : > { %s1489_s28 = scalar_select %p1234_p12, 1, 0 }
  0x19   : > { %p1238_p13 = pnand %p801_p9, %p148_p10  ;;  %s160_s5 = sshll.u32 %s1143_s30, 4  ;;  %s161_s5 = int_to_ptr.vmem [resolvable:$true] %s160_s5 }
  0x1a   : > { %s1253_s7 = sand.u32 1, %s1137_s17   ;;  %s1492_s2 = sld [smem:[#allocation15_spill]] }
  0x1b   : > { %s1490_s29 = scalar_select %p1238_p13, 1, 0 }
  0x1c   : > { %p867_p1 = pneg %p1238_p13 }
  0x1e   : > { %p1246_p2 = pnand %p867_p1, %p1478_p4 }
  0x20   : > { %s979_s10 = scalar_lea.hbm %s1492_s2, 4096  ;;  %p981_p8 = pneg %p1246_p2 }
  0x21   : > { %p980_p7 = scmp.ne.s32.totalorder %s1492_s2, %s979_s10  ;;  %p986_p1 = scmp.lt.u32.totalorder %s979_s10, %s1492_s2 }
  0x23   : > { %p982_p9 = pnand %p981_p8, %p980_p7 }
  0x25   : > { %p983_p10 = pneg %p982_p9 }
  0x27   : > { %p988_p0 = pnand %p986_p1, %p983_p10 }
  0x29   : > { %991 = shalt.err (!%p988_p0)
}
  0x2a   : > { %s992_s20 = scalar_lea.vmem %s161_s5, 4096  ;;  %p1000_p11 = scmp.lt.s32.totalorder %s161_s5, %s161_s5 }
  0x2b   : > { %p993_p4 = scmp.ne.s32.totalorder %s161_s5, %s992_s20  ;;  %p1001_p6 = scmp.lt.s32.totalorder %s992_s20, %s992_s20 }
  0x2d   : > { %p995_p3 = pnand %p993_p4, %p981_p8  ;;  %p1002_p13 = por %p1001_p6, %p1000_p11 }
  0x2f   : > { %p996_p12 = pneg %p995_p3 }
  0x31   : > { %p1003_p5 = pnand %p1002_p13, %p996_p12 }
  0x33   : > { %1006 = shalt.err (!%p1003_p5)
}
  0x34   : > { %s1482_s22 = smov 128   ;;  %s1145_s23 = smov 8  }
  0x35   : > { %870 = dma.hbm_to_vmem [thread:$0]  (!%p1246_p2), %s1492_s2, 4096, %s161_s5, [#allocation6], %s1482_s22, %s1482_s22, %s1145_s23  }
  0x36   : > { %p1493_p4 = scmp.ne.s32.totalorder %s1486_s25, 0  ;;  %p1494_p6 = scmp.lt.s32.totalorder %s1141_s18, 2 }
  0x37   : > { %s804_s10 = sshll.u32 %s1253_s7, 4  ;;  %s854_s11 = sshll.u32 %s1141_s18, 7 }
  0x38   : > { %p1278_p5 = pnand %p1494_p6, %p1493_p4  ;;  %s1496_s0 = sld [smem:[#allocation14_spill]] }
  0x39   : > { %s181_s5 = scalar_lea.vmem [#allocation2], %s804_s10  ;;  %s178_s20 = scalar_lea.sflag [#allocation3], %s1253_s7 }
  0x3a   : > { %s188_s25 = sshll.u32 %s181_s5, 4  ;;  %p1009_p12 = pneg %p1278_p5  ;;  %s1289_s25 = int_to_ptr.vmem [resolvable:$true] %s188_s25 }
  0x3e   : > { %s1287_s6 = scalar_lea.hbm %s1496_s0, %s854_s11  ;;  %s1012_s12 = scalar_lea.hbm %s1496_s0, 512 }
  0x3f   : > { %s1007_s30 = scalar_lea.hbm %s1287_s6, 256  ;;  %p1013_p0 = scmp.lt.u32.totalorder %s1287_s6, %s1496_s0 }
  0x40   : > { %p1008_p11 = scmp.ne.s32.totalorder %s1287_s6, %s1007_s30  ;;  %p1014_p3 = scmp.lt.u32.totalorder %s1012_s12, %s1007_s30 }
  0x41   : > { %p1016_p8 = scmp.lt.u32.totalorder %s1007_s30, %s1287_s6 }
  0x42   : > { %p1010_p13 = pnand %p1009_p12, %p1008_p11  ;;  %p1015_p7 = por %p1014_p3, %p1013_p0 }
  0x44   : > { %p1011_p2 = pneg %p1010_p13  ;;  %p1017_p9 = por %p1016_p8, %p1015_p7 }
  0x46   : > { %p1018_p10 = pnand %p1017_p9, %p1011_p2 }
  0x48   : > { %1021 = shalt.err (!%p1018_p10)
}
  0x49   : > { %s1022_s10 = scalar_lea.vmem %s1289_s25, 256  ;;  %s1146_s5 = smov [#allocation2]  }
  0x4a   : > { %p1023_p1 = scmp.ne.s32.totalorder %s1289_s25, %s1022_s10  ;;  %s1027_s8 = sshll.u32 %s1146_s5, 4  ;;  %s1028_s8 = int_to_ptr.vmem [resolvable:$false] %s1027_s8 }
  0x4b   : > { %s1029_s22 = scalar_lea.vmem %s1028_s8, 512  ;;  %p1030_p11 = scmp.lt.s32.totalorder %s1289_s25, %s1028_s8 }
  0x4c   : > { %p1025_p4 = pnand %p1023_p1, %p1009_p12  ;;  %p1031_p13 = scmp.lt.s32.totalorder %s1029_s22, %s1022_s10 }
  0x4e   : > { %p1026_p6 = pneg %p1025_p4  ;;  %p1032_p0 = por %p1031_p13, %p1030_p11 }
  0x50   : > { %p1033_p3 = pnand %p1032_p0, %p1026_p6 }
  0x52   : > { %1036 = shalt.err (!%p1033_p3)
}
  0x53   : > { %s1147_s30 = smov 256   ;;  %s1497_s11 = smov 128  }
  0x54   : > { %874 = dma.hbm_to_vmem [thread:$0]  (!%p1278_p5), %s1287_s6, 256, %s1289_s25, %s178_s20, %s1147_s30, %s1497_s11, %s1145_s23  }
  0x55   : > { %s807_s12 = sshll.u32 %s1253_s7, 1  ;;  %s855_s13 = sshll.u32 %s1141_s18, 5 }
  0x56   : > { %s1327_s8 = scalar_lea.hbm %s1474_s1, %s855_s13  ;;  %s202_s22 = scalar_lea.vmem [#allocation5], %s807_s12 }
  0x57   : > { %s210_s14 = sshll.u32 %s202_s22, 4  ;;  %s1498_s0 = sand.u32 1, %s1141_s18   ;;  %s211_s14 = int_to_ptr.vmem [resolvable:$true] %s210_s14 }
  0x58   : > { %s199_s2 = scalar_lea.sflag [#allocation6], %s1498_s0  ;;  %s1037_s24 = scalar_lea.hbm %s1327_s8, 32 }
  0x59   : > { %p1038_p2 = scmp.ne.s32.totalorder %s1327_s8, %s1037_s24  ;;  %s1042_s6 = scalar_lea.hbm %s1474_s1, 64 }
  0x5a   : > { %p1043_p9 = scmp.lt.u32.totalorder %s1327_s8, %s1474_s1  ;;  %p1044_p10 = scmp.lt.u32.totalorder %s1042_s6, %s1037_s24 }
  0x5b   : > { %p1040_p7 = pnand %p1038_p2, %p1009_p12  ;;  %p1046_p4 = scmp.lt.u32.totalorder %s1037_s24, %s1327_s8 }
  0x5c   : > { %p1045_p1 = por %p1044_p10, %p1043_p9 }
  0x5d   : > { %p1041_p8 = pneg %p1040_p7 }
  0x5e   : > { %p1047_p6 = por %p1046_p4, %p1045_p1 }
  0x60   : > { %p1048_p11 = pnand %p1047_p6, %p1041_p8 }
  0x62   : > { %1051 = shalt.err (!%p1048_p11)
}
  0x63   : > { %s1052_s0 = scalar_lea.vmem %s211_s14, 32  ;;  %s1148_s30 = smov [#allocation5]  }
  0x64   : > { %p1053_p13 = scmp.ne.s32.totalorder %s211_s14, %s1052_s0  ;;  %s1057_s11 = sshll.u32 %s1148_s30, 4  ;;  %s1058_s11 = int_to_ptr.vmem [resolvable:$false] %s1057_s11 }
  0x65   : > { %s1059_s12 = scalar_lea.vmem %s1058_s11, 64  ;;  %p1060_p2 = scmp.lt.s32.totalorder %s211_s14, %s1058_s11 }
  0x66   : > { %p1055_p0 = pnand %p1053_p13, %p1009_p12  ;;  %p1061_p7 = scmp.lt.s32.totalorder %s1059_s12, %s1052_s0 }
  0x68   : > { %p1056_p3 = pneg %p1055_p0  ;;  %p1062_p9 = por %p1061_p7, %p1060_p2 }
  0x6a   : > { %p1063_p10 = pnand %p1062_p9, %p1056_p3 }
  0x6c   : > { %1066 = shalt.err (!%p1063_p10)
}
  0x6d   : > { %877 = dma.hbm_to_vmem [thread:$0]  (!%p1278_p5), %s1327_s8, 32, %s211_s14, %s199_s2  }
  0x6e   : > { %p1499_p8 = scmp.ne.s32.totalorder %s1490_s29, 0 }
  0x6f   : > { %s1353_s24 = sand.u32 (!%p1499_p8), 1, %s1133_s16   ;;  %p1500_p12 = scmp.ne.s32.totalorder (!%p1499_p8), %s1487_s26, 0 }
  0x70   : > { %219 = sbr.rel (%p1499_p8) target bundleno = 438 (0x1b6), region = 36  ;;  %s811_s13 = sshll.u32 (!%p1499_p8), %s1353_s24, 4 }
  0x71   : > { %s222_s10 = scalar_lea.sflag (!%p1499_p8), [#allocation3], %s1353_s24  ;;  %s1359_s5 = scalar_lea.vmem (!%p1499_p8), [#allocation2], %s811_s13 }
  0x77   : > { %1112 = dma.done.wait (%p1500_p12), %s222_s10, 256  }
  0x78   : > { %1114 = vsyncadd (%p1500_p12), %s222_s10, 4294967040  ;;  %s230_s2 = sand.u32 1, %s1199_s19   ;;  %s812_s29 = sshll.u32 %s1353_s24, 1 }
  0x79   : > { %s231_s9 = scalar_lea.sflag [#allocation6], %s230_s2  ;;  %s1367_s14 = scalar_lea.vmem [#allocation5], %s812_s29 }
  0x7a   : > { %1116 = dma.done.wait (%p1500_p12), %s231_s9, 32  }
  0x7b   : > { %1118 = vsyncadd (%p1500_p12), %s231_s9, 4294967264  ;;  %p1501_p5 = scmp.eq.s32.totalorder %s1199_s19, 0 }
  0x7d   : > { %1120 = dma.done.wait (%p1501_p5), [#allocation6], 4096   ;;  %p1502_p1 = pmov %p1501_p5 }
  0x7e   : > { %v925_v0 = vld [vmem:[#allocation7 + $0x4] ss:$8 sps:$4 sm:$0xff]   ;;  %v927_v1 = vld [vmem:[#allocation7] ss:$8 sps:$4 sm:$0xff]   ;;  %v928_v2 = vld [vmem:[#allocation7 + $0x14] ss:$8 sps:$4 sm:$0xff]  }
  0x7f   : > { %1122 = vsyncadd (%p1502_p1), [#allocation6], 4294963200  ;;  %551 = vmatprep.subr.bf16.mxu0 %v925_v0  ;;  %v930_v3 = vld [vmem:[#allocation7 + $0x10] ss:$8 sps:$4 sm:$0xff]   ;;  %v931_v4 = vld [vmem:[#allocation7 + $0x24] ss:$8 sps:$4 sm:$0xff]  }
  0x80   : > { %552 = vmatpush1.bf16.msra.mxu0 %v927_v1  ;;  %v933_v5 = vld [vmem:[#allocation7 + $0x20] ss:$8 sps:$4 sm:$0xff]   ;;  %v934_v6 = vld [vmem:[#allocation7 + $0x34] ss:$8 sps:$4 sm:$0xff]   ;;  %v936_v7 = vld [vmem:[#allocation7 + $0x30] ss:$8 sps:$4 sm:$0xff]  }
  0x81   : > { %553 = vmatprep.subr.bf16.mxu0 %v928_v2  ;;  %v937_v8 = vld [vmem:[#allocation7 + $0x44] ss:$8 sps:$4 sm:$0xff]   ;;  %v939_v9 = vld [vmem:[#allocation7 + $0x40] ss:$8 sps:$4 sm:$0xff]   ;;  %v940_v10 = vld [vmem:[#allocation7 + $0x54] ss:$8 sps:$4 sm:$0xff]  }
  0x82   : > { %v942_v11 = vld [vmem:[#allocation7 + $0x50] ss:$8 sps:$4 sm:$0xff]   ;;  %v943_v12 = vld [vmem:[#allocation7 + $0x64] ss:$8 sps:$4 sm:$0xff]   ;;  %v945_v17 = vld [vmem:[#allocation7 + $0x60] ss:$8 sps:$4 sm:$0xff]  }
  0x83   : > { %v1378_v13 = vld [vmem:[%s1359_s5] sm:$0xff]  ;;  %v1381_v14 = vld [vmem:[%s1359_s5 + $0x8] sm:$0xff]  ;;  %vm277_vm0 = vcmask 1043456   ;;  %vm342_vm1 = vcmask 1040384   ;;  %s856_s22 = sshll.u32 %s1199_s19, 7  ;;  %s267_s7 = scalar_lea.vmem [#allocation8], %s811_s13 }
  0x84   : > { %554 = vmatpush1.bf16.msra.mxu0 %v930_v3  ;;  %v271_v15 = vmul.f32 %v1378_v13, %v1378_v13  ;;  %v272_v16 = vmul.f32 %v1381_v14, %v1381_v14  ;;  %v946_v18 = vld [vmem:[#allocation7 + $0x74] ss:$8 sps:$4 sm:$0xff]   ;;  %v948_v22 = vld [vmem:[#allocation7 + $0x70] ss:$8 sps:$4 sm:$0xff]   ;;  %v949_v24 = vld [vmem:[#allocation7 + $0x84] ss:$8 sps:$4 sm:$0xff]   ;;  %s1427_s20 = scalar_lea.hbm %s1477_s4, %s856_s22 }
  0x85   : > { %555 = vmatprep.subr.bf16.mxu0 %v931_v4  ;;  %v951_v28 = vld [vmem:[#allocation7 + $0x80] ss:$8 sps:$4 sm:$0xff]   ;;  %v952_v31 = vld [vmem:[#allocation7 + $0x94] ss:$8 sps:$4 sm:$0xff]   ;;  %v954_v34 = vld [vmem:[#allocation7 + $0x90] ss:$8 sps:$4 sm:$0xff]  }
  0x86   : > { %v273_v19 = vadd.f32 %v272_v16, %v271_v15  ;;  %v955_v37 = vld [vmem:[#allocation7 + $0xa4] ss:$8 sps:$4 sm:$0xff]   ;;  %v957_v40 = vld [vmem:[#allocation7 + $0xa0] ss:$8 sps:$4 sm:$0xff]   ;;  %v958_v43 = vld [vmem:[#allocation7 + $0xb4] ss:$8 sps:$4 sm:$0xff]  }
  0x87   : > { %v960_v45 = vld [vmem:[#allocation7 + $0xb0] ss:$8 sps:$4 sm:$0xff]   ;;  %v961_v46 = vld [vmem:[#allocation7 + $0xc4] ss:$8 sps:$4 sm:$0xff]   ;;  %v963_v47 = vld [vmem:[#allocation7 + $0xc0] ss:$8 sps:$4 sm:$0xff]  }
  0x88   : > { %556 = vmatpush1.bf16.msra.mxu0 %v933_v5  ;;  %v275_v20 = vcombine.high %v273_v19, %v273_v19  ;;  %v278_v21 = vsel %vm277_vm0, %v273_v19, 0.0  ;;  %v964_v48 = vld [vmem:[#allocation7 + $0xd4] ss:$8 sps:$4 sm:$0xff]   ;;  %v966_v50 = vld [vmem:[#allocation7 + $0xd0] ss:$8 sps:$4 sm:$0xff]   ;;  %s695_s23 = sshll.u32 %s267_s7, 4  ;;  %s1429_s23 = int_to_ptr.vmem [resolvable:$true] %s695_s23 }
  0x89   : > { %557 = vmatprep.subr.bf16.mxu0 %v934_v6  ;;  %v279_v23 = vrot.slane %v278_v21, 4  ;;  %v967_v51 = vld [vmem:[#allocation7 + $0xe4] ss:$8 sps:$4 sm:$0xff]   ;;  %v969_v54 = vld [vmem:[#allocation7 + $0xe0] ss:$8 sps:$4 sm:$0xff]   ;;  %s682_s19 = scalar_lea.sflag [#allocation4], %s1353_s24 }
  0x8a   : > { %v285_v25 = vsel %vm277_vm0, %v275_v20, 0.0  ;;  %v970_v55 = vld [vmem:[#allocation7 + $0xf4] ss:$8 sps:$4 sm:$0xff]   ;;  %v972_v62 = vld [vmem:[#allocation7 + $0xf0] ss:$8 sps:$4 sm:$0xff]   ;;  %s1067_s0 = scalar_lea.vmem %s1429_s23, 256 }
  0x8b   : > { %v280_v26 = vadd.f32 %v279_v23, %v278_v21  ;;  %v286_v27 = vrot.slane %v285_v25, 4  ;;  %p1068_p4 = scmp.ne.s32.totalorder %s1429_s23, %s1067_s0  ;;  %p1503_p6 = scmp.ne.s32.totalorder %s1488_s27, 0 }
  0x8c   : > { %558 = vmatpush1.bf16.msra.mxu0 %v936_v7  ;;  %s1149_s30 = smov [#allocation8]  }
  0x8d   : > { %559 = vmatprep.subr.bf16.mxu0 %v937_v8  ;;  %v281_v29 = vrot.slane %v280_v26, 2  ;;  %v287_v30 = vadd.f32 %v286_v27, %v285_v25  ;;  %p1069_p11 = pnand %p1068_p4, %p1503_p6  ;;  %s1071_s11 = sshll.u32 %s1149_s30, 4  ;;  %s1072_s11 = int_to_ptr.vmem [resolvable:$false] %s1071_s11 }
  0x8e   : > { %s1073_s12 = scalar_lea.vmem %s1072_s11, 512  ;;  %p1074_p0 = scmp.lt.s32.totalorder %s1429_s23, %s1072_s11 }
  0x8f   : > { %v282_v32 = vadd.f32 %v281_v29, %v280_v26  ;;  %v288_v33 = vrot.slane %v287_v30, 2  ;;  %p1070_p13 = pneg %p1069_p11  ;;  %p1075_p3 = scmp.lt.s32.totalorder %s1073_s12, %s1067_s0 }
  0x90   : > { %560 = vmatpush1.bf16.msra.mxu0 %v939_v9 }
  0x91   : > { %561 = vmatprep.subr.bf16.mxu0 %v940_v10  ;;  %v283_v35 = vrot.slane %v282_v32, 1  ;;  %v289_v36 = vadd.f32 %v288_v33, %v287_v30  ;;  %p1076_p2 = por %p1075_p3, %p1074_p0 }
  0x93   : > { %v284_v38 = vadd.f32 %v283_v35, %v282_v32  ;;  %v290_v39 = vrot.slane %v289_v36, 1  ;;  %p1077_p7 = pnand %p1076_p2, %p1070_p13 }
  0x94   : > { %562 = vmatpush1.bf16.msra.mxu0 %v942_v11 }
  0x95   : > { %563 = vmatprep.subr.bf16.mxu0 %v943_v12  ;;  %v291_v41 = vadd.f32 %v290_v39, %v289_v36  ;;  %v292_v42 = vadd.f32 1e-08, %v284_v38 }
  0x97   : > { %v293_v44 = vadd.f32 1e-08, %v291_v41  ;;  %975 = vrsqrt.f32 %v292_v42 }
  0x98   : > { %564 = vmatpush1.bf16.msra.mxu0 %v945_v17 }
  0x99   : > { %565 = vmatprep.subr.bf16.mxu0 %v946_v18  ;;  %977 = vrsqrt.f32 %v293_v44 }
  0x9c   : > { %566 = vmatpush1.bf16.msra.mxu0 %v948_v22 }
  0x9d   : > { %567 = vmatprep.subr.bf16.mxu0 %v949_v24 }
  0xa0   : > { %568 = vmatpush1.bf16.msra.mxu0 %v951_v28 }
  0xa1   : > { %569 = vmatprep.subr.bf16.mxu0 %v952_v31  ;;  %v976_v49 = vpop.eup %975 }
  0xa3   : > { %v978_v52 = vpop.eup %977 }
  0xa4   : > { %570 = vmatpush1.bf16.msra.mxu0 %v954_v34  ;;  %v298_v53 = vcombine.low %v976_v49, %v978_v52 }
  0xa5   : > { %571 = vmatprep.subr.bf16.mxu0 %v955_v37  ;;  %v381_v37 = vlaneseq }
  0xa6   : > { %v1390_v56 = vmul.f32 %v298_v53, %v1378_v13  ;;  %v1393_v57 = vmul.f32 %v1381_v14, %v298_v53 }
  0xa7   : > { %v382_v38 = vshrl.u32 %v381_v37, 7 }
  0xa8   : > { %572 = vmatpush1.bf16.msra.mxu0 %v957_v40  ;;  %v302_v58 = vmul.f32 %v1390_v56, %v1378_v13  ;;  %v303_v59 = vmul.f32 %v1381_v14, %v1393_v57  ;;  %v322_v60 = vmul.f32 %v1381_v14, %v1390_v56  ;;  %v323_v61 = vmul.f32 %v1393_v57, %v1378_v13  ;;  %v379_v40 = vld [vmem:[%s1476_s3] sm:$0x3] }
  0xa9   : > { %573 = vmatprep.subr.bf16.mxu0 %v958_v43  ;;  %v383_v39 = vsub.s32 0, %v382_v38  ;;  %v387_v41 = vsub.s32 1, %v382_v38 }
  0xaa   : > { %v304_v63 = vadd.f32 %v303_v59, %v302_v58  ;;  %v324_v0 = vsub.f32 %v322_v60, %v323_v61 }
  0xab   : > { %v384_v42 = vrot.slane %v379_v40, %v383_v39  ;;  %v388_v43 = vrot.slane %v379_v40, %v387_v41 }
  0xac   : > { %574 = vmatpush1.bf16.msra.mxu0 %v960_v45  ;;  %v306_v1 = vcombine.high %v304_v63, %v304_v63  ;;  %v326_v2 = vcombine.high %v324_v0, %v324_v0  ;;  %v308_v3 = vsel %vm277_vm0, %v304_v63, 0.0  ;;  %v328_v4 = vsel %vm277_vm0, %v324_v0, 0.0  ;;  %v622_v45 = vld [vmem:[%s1367_s14] sm:$0x3] }
  0xad   : > { %575 = vmatprep.subr.bf16.mxu0 %v961_v46  ;;  %v309_v5 = vrot.slane %v308_v3, 4  ;;  %v329_v6 = vrot.slane %v328_v4, 4  ;;  %v639_v52 = vsub.f32 1.0, %v622_v45  ;;  %v627_v60 = vrot.slane %v622_v45, %v383_v39 }
  0xae   : > { %v315_v7 = vsel %vm277_vm0, %v306_v1, 0.0  ;;  %v335_v8 = vsel %vm277_vm0, %v326_v2, 0.0  ;;  %v631_v61 = vrot.slane %v622_v45, %v387_v41  ;;  %v664_v0 = vcombine.high %v1381_v14, %v1381_v14 }
  0xaf   : > { %v316_v9 = vrot.slane %v315_v7, 4  ;;  %v336_v10 = vrot.slane %v335_v8, 4  ;;  %v310_v11 = vadd.f32 %v309_v5, %v308_v3  ;;  %v330_v12 = vadd.f32 %v329_v6, %v328_v4 }
  0xb0   : > { %576 = vmatpush1.bf16.msra.mxu0 %v963_v47  ;;  %v644_v63 = vrot.slane %v639_v52, %v383_v39 }
  0xb1   : > { %577 = vmatprep.subr.bf16.mxu0 %v964_v48  ;;  %v317_v15 = vadd.f32 %v316_v9, %v315_v7  ;;  %v337_v16 = vadd.f32 %v336_v10, %v335_v8  ;;  %v311_v17 = vrot.slane %v310_v11, 2  ;;  %v331_v18 = vrot.slane %v330_v12, 2 }
  0xb2   : > { %v648_v7 = vrot.slane %v639_v52, %v387_v41  ;;  %v637_v8 = vmul.f32 %v627_v60, %v1378_v13  ;;  %v666_v10 = vmul.f32 %v1381_v14, %v627_v60 }
  0xb3   : > { %v318_v19 = vrot.slane %v317_v15, 2  ;;  %v338_v20 = vrot.slane %v337_v16, 2  ;;  %v312_v21 = vadd.f32 %v311_v17, %v310_v11  ;;  %v332_v22 = vadd.f32 %v331_v18, %v330_v12 }
  0xb4   : > { %578 = vmatpush1.bf16.msra.mxu0 %v966_v50  ;;  %v667_v11 = vmul.f32 %v664_v0, %v631_v61 }
  0xb5   : > { %579 = vmatprep.subr.bf16.mxu0 %v967_v51  ;;  %v319_v23 = vadd.f32 %v318_v19, %v317_v15  ;;  %v339_v24 = vadd.f32 %v338_v20, %v337_v16  ;;  %v313_v25 = vrot.slane %v312_v21, 1  ;;  %v333_v26 = vrot.slane %v332_v22, 1 }
  0xb7   : > { %v320_v27 = vrot.slane %v319_v23, 1  ;;  %v340_v28 = vrot.slane %v339_v24, 1  ;;  %v314_v29 = vadd.f32 %v313_v25, %v312_v21  ;;  %v334_v30 = vadd.f32 %v333_v26, %v332_v22 }
  0xb8   : > { %580 = vmatpush1.bf16.msra.mxu0 %v969_v54 }
  0xb9   : > { %581 = vmatprep.subr.bf16.mxu0 %v970_v55  ;;  %v321_v31 = vadd.f32 %v320_v27, %v319_v23  ;;  %v341_v32 = vadd.f32 %v340_v28, %v339_v24  ;;  %v343_v33 = vsel %vm342_vm1, %v314_v29, %v334_v30 }
  0xba   : > { %v345_v35 = vpack.c.bf16 %v343_v33, %v343_v33 }
  0xbb   : > { %v344_v34 = vsel %vm342_vm1, %v321_v31, %v341_v32 }
  0xbc   : > { %582 = vmatpush1.bf16.msra.mxu0 %v972_v62  ;;  %v346_v36 = vpack.c.bf16 %v344_v34, %v344_v34  ;;  %v635_v62 = vcombine.high %v1378_v13, %v1378_v13 }
  0xbe   : > { %583 = vmatprep.mubr.bf16.mxu0 %v346_v36  ;;  %v638_v9 = vmul.f32 %v635_v62, %v631_v61 }
  0xbf   : > { %584 = vmatmul.mubr.bf16.vlgmr.msra.gmra.mrb[0].mxu0 %v345_v35 }
 0x192   : > { %v585_v44 = vpop.f32.mrb[0].mxu0 }
 0x193   : > { %v586_v46 = vadd.f32 %v585_v44, %v384_v42  ;;  %v587_v47 = vpop.f32.mrb[1].mxu0 }
 0x194   : > { %v588_v48 = vadd.f32 %v587_v47, %v388_v43  ;;  %v589_v49 = vpop.f32.mrb[2].mxu0 }
 0x195   : > { %v595_v50 = vrot.slane %v586_v46, %v383_v39  ;;  %v608_v51 = vrot.slane %v586_v46, %v387_v41  ;;  %v590_v53 = vpop.f32.mrb[3].mxu0 }
 0x196   : > { %v599_v54 = vrot.slane %v588_v48, %v383_v39  ;;  %v612_v55 = vrot.slane %v588_v48, %v387_v41 }
 0x198   : > { %v602_v58 = vcombine.low %v595_v50, %v599_v54  ;;  %v615_v59 = vcombine.low %v608_v51, %v612_v55 }
 0x19a   : > { %v604_v1 = vmul.f32 %v602_v58, %v1390_v56  ;;  %v617_v2 = vmul.f32 %v615_v59, %v1393_v57  ;;  %v619_v3 = vmul.f32 %v615_v59, %v1390_v56  ;;  %v620_v4 = vmul.f32 %v602_v58, %v1393_v57 }
 0x19c   : > { %v618_v5 = vsub.f32 %v604_v1, %v617_v2  ;;  %v621_v6 = vadd.f32 %v620_v4, %v619_v3 }
 0x19e   : > { %v652_v12 = vcombine.high %v618_v5, %v618_v5  ;;  %v654_v15 = vmul.f32 %v644_v63, %v618_v5  ;;  %v669_v16 = vcombine.high %v621_v6, %v621_v6  ;;  %v671_v17 = vmul.f32 %v644_v63, %v621_v6 }
 0x1a0   : > { %v655_v18 = vmul.f32 %v652_v12, %v648_v7  ;;  %v672_v56 = vmul.f32 %v669_v16, %v648_v7  ;;  %v656_v57 = vadd.f32 %v654_v15, %v637_v8  ;;  %v673_v20 = vadd.f32 %v671_v17, %v666_v10 }
 0x1a2   : > { %v657_v19 = vadd.f32 %v655_v18, %v638_v9  ;;  %v674_v13 = vadd.f32 %v672_v56, %v667_v11 }
 0x1a4   : > { %v660_v14 = vcombine.low %v656_v57, %v657_v19  ;;  %v677_v21 = vcombine.low %v673_v20, %v674_v13 }
 0x1a6   : > { %662 = vst [vmem:[%s267_s7] sm:$0xff] %v660_v14  ;;  %848 = vst [vmem:[%s267_s7 + $0x8] sm:$0xff] %v677_v21 }
 0x1a7   : > { %1080 = shalt.err (!%p1077_p7)
}
 0x1a8   : > { %s1081_s13 = scalar_lea.hbm %s1427_s20, 256  ;;  %s1085_s2 = scalar_lea.hbm %s1477_s4, 512 }
 0x1a9   : > { %p1082_p9 = scmp.ne.s32.totalorder %s1427_s20, %s1081_s13  ;;  %p1086_p12 = scmp.lt.u32.totalorder %s1427_s20, %s1477_s4 }
 0x1aa   : > { %p1087_p5 = scmp.lt.u32.totalorder %s1085_s2, %s1081_s13  ;;  %p1089_p4 = scmp.lt.u32.totalorder %s1081_s13, %s1427_s20 }
 0x1ab   : > { %p1083_p10 = pnand %p1082_p9, %p1503_p6 }
 0x1ac   : > { %p1088_p1 = por %p1087_p5, %p1086_p12 }
 0x1ad   : > { %p1084_p8 = pneg %p1083_p10 }
 0x1ae   : > { %p1090_p11 = por %p1089_p4, %p1088_p1 }
 0x1b0   : > { %p1091_p13 = pnand %p1090_p11, %p1084_p8 }
 0x1b2   : > { %1094 = shalt.err (!%p1091_p13)
}
 0x1b3   : > { %s1150_s14 = smov 128   ;;  %s1151_s26 = smov 256  }
 0x1b4   : > { %s1152_s8 = smov 8  }
 0x1b5   : > { %865 = dma.vmem_to_hbm [thread:$0]  (%p1503_p6), %s1429_s23, 256, %s1427_s20, %s682_s19, %s1150_s14, %s1151_s26, %s1152_s8  }
 0x1b6 PF: > { %s710_s22 = sand.u32 1, %s1129_s15   ;;  %p1504_p0 = scmp.ne.s32.totalorder %s1489_s28, 0 }
 0x1b7   : > { %p1505_p3 = scmp.ge.s32.totalorder %s1141_s18, 2  ;;  %s711_s7 = scalar_lea.sflag [#allocation4], %s710_s22 }
 0x1b9   : > { %p879_p2 = pnand %p1505_p3, %p1504_p0 }
 0x1bb   : > { %1124 = dma.done.wait (!%p879_p2), %s711_s7, 256  }
 0x1bc   : > { %1126 = vsyncadd (!%p879_p2), %s711_s7, 4294967040  ;;  %s1506_s6 = sld [smem:[#allocation13_spill]]  ;;  %p20_p7 = scmp.ge.s32.totalorder %s1203_s21, 4  }
 0x1bd   : > { %s1507_s15 = smov %s1133_s16  ;;  %s1508_s16 = smov %s1137_s17 }
 0x1be   : > { %s1510_s18 = smov %s1203_s21  ;;  %22 = sbr.rel (!%p20_p7) target bundleno = 10 (0xa), region = 100 }
 0x1c2   : > { %s1509_s17 = smov %s1506_s6 }
 0x1c5   :  { %716 = vsyncpa [#allocation3], 1 }
 0x1c6   :  { %718 = vsyncpa [#allocation3 + $0x1], 1 }
 0x1c7   :  { %719 = vsyncpa [#allocation6], 1 }
 0x1c8   :  { %721 = vsyncpa [#allocation6 + $0x1], 1 }
 0x1c9   :  { %722 = vsyncpa [#allocation4], 1 }
 0x1ca   :  { %724 = vsyncpa [#allocation4 + $0x1], 1 }

</bundles_post_ra>
